<compile_context>
chip_gen: v5e
topology: v5e:2x2
jax: 0.10.0
libtpu: 0.0.40
codegen_flags: <defaults>
</compile_context>

<pallas_src>
import math

import jax
import jax.numpy as jnp
from jax import lax
from jax.experimental import pallas as pl
from jax.experimental.pallas import tpu as pltpu


def _linear_kernel_acc(x_ref, w_ref, o_ref, acc_ref):
    # Multi-K-tile path.
    # x_ref: [tm, tk]   rows of the flattened input
    # w_ref: [tn, tk]   rows of the PyTorch [output, input] weight
    # o_ref: [tm, tn]
    # acc_ref: [tm, tn] f32 accumulator, resident across the K grid axis.
    @pl.when(pl.program_id(2) == 0)
    def _():
        acc_ref[...] = jnp.zeros_like(acc_ref)

    # Contract x's K (dim 1) with weight's K (dim 1): y = x @ W^T on the MXU,
    # no transposed copy of the weight anywhere.
    acc_ref[...] += lax.dot_general(
        x_ref[...],
        w_ref[...],
        dimension_numbers=(((1,), (1,)), ((), ())),
        preferred_element_type=jnp.float32,
    )

    @pl.when(pl.program_id(2) == pl.num_programs(2) - 1)
    def _():
        o_ref[...] = acc_ref[...].astype(o_ref.dtype)


def _linear_kernel_single_k(x_ref, w_ref, o_ref):
    # Single-K-tile path: no scratch, no init, no extra VMEM copy.
    o_ref[...] = lax.dot_general(
        x_ref[...],
        w_ref[...],
        dimension_numbers=(((1,), (1,)), ((), ())),
        preferred_element_type=jnp.float32,
    ).astype(o_ref.dtype)


def _round_up(x, m):
    return ((x + m - 1) // m) * m


def linear_forward(x, weight, *, compute_dtype=None, tm=512, tn=512, tk=512):
    """y = x @ weight.T  (torch.nn.functional.linear, no bias).

    x: [..., input_size], weight: [output_size, input_size].
    compute_dtype: optionally cast operands (e.g. jnp.bfloat16) for MXU peak
    rate; accumulation stays f32 and the output keeps x's dtype.
    """
    *lead, k = x.shape
    m_out, k_w = weight.shape
    assert k == k_w, f"input feature dim {k} != weight input dim {k_w}"

    x2d = x.reshape((-1, k))
    b = x2d.shape[0]
    out_dtype = x.dtype

    if compute_dtype is not None:
        x2d = x2d.astype(compute_dtype)
        weight = weight.astype(compute_dtype)

    # Clamp tiles to the (padded) problem size; keep (8, 128) alignment.
    tm = min(tm, _round_up(b, 8))
    tn = min(tn, _round_up(m_out, 128))
    tk = min(tk, _round_up(k, 128))

    b_p = _round_up(b, tm)
    n_p = _round_up(m_out, tn)
    k_p = _round_up(k, tk)

    # Zero-padding is exact for a matmul; padded rows/cols are sliced off.
    if (b_p, k_p) != (b, k):
        x2d = jnp.pad(x2d, ((0, b_p - b), (0, k_p - k)))
    if (n_p, k_p) != (m_out, k):
        weight = jnp.pad(weight, ((0, n_p - m_out), (0, k_p - k)))

    grid_m, grid_n, grid_k = b_p // tm, n_p // tn, k_p // tk

    cost = pl.CostEstimate(
        flops=2 * b_p * n_p * k_p,
        transcendentals=0,
        bytes_accessed=int(
            x2d.size * x2d.dtype.itemsize
            + weight.size * weight.dtype.itemsize
            + b_p * n_p * jnp.dtype(out_dtype).itemsize
        ),
    )

    if grid_k == 1:
        # Whole contraction fits a single K tile: direct-write kernel.
        out = pl.pallas_call(
            _linear_kernel_single_k,
            out_shape=jax.ShapeDtypeStruct((b_p, n_p), out_dtype),
            grid_spec=pltpu.PrefetchScalarGridSpec(
                num_scalar_prefetch=0,
                grid=(grid_m, grid_n),
                in_specs=[
                    pl.BlockSpec((tm, tk), lambda i, j: (i, 0)),   # x rows
                    pl.BlockSpec((tn, tk), lambda i, j: (j, 0)),   # W rows
                ],
                out_specs=pl.BlockSpec((tm, tn), lambda i, j: (i, j)),
            ),
            compiler_params=pltpu.CompilerParams(
                dimension_semantics=("parallel", "parallel"),
            ),
            cost_estimate=cost,
        )(x2d, weight)
    else:
        out = pl.pallas_call(
            _linear_kernel_acc,
            out_shape=jax.ShapeDtypeStruct((b_p, n_p), out_dtype),
            grid_spec=pltpu.PrefetchScalarGridSpec(
                num_scalar_prefetch=0,
                grid=(grid_m, grid_n, grid_k),
                in_specs=[
                    pl.BlockSpec((tm, tk), lambda i, j, kk: (i, kk)),   # x rows
                    pl.BlockSpec((tn, tk), lambda i, j, kk: (j, kk)),   # W rows
                ],
                out_specs=pl.BlockSpec((tm, tn), lambda i, j, kk: (i, j)),
                scratch_shapes=[pltpu.VMEM((tm, tn), jnp.float32)],
            ),
            compiler_params=pltpu.CompilerParams(
                dimension_semantics=("parallel", "parallel", "arbitrary"),
            ),
            cost_estimate=cost,
        )(x2d, weight)

    if (b_p, n_p) != (b, m_out):
        out = out[:b, :m_out]
    return out.reshape((*lead, m_out))


def init_linear_weight(key, output_size, input_size, dtype=jnp.float32):
    """kaiming_uniform_(a=sqrt(5)) equivalent:
    uniform(-1/sqrt(fan_in), 1/sqrt(fan_in)) with fan_in = input_size."""
    bound = 1.0 / math.sqrt(input_size)
    return jax.random.uniform(
        key, (output_size, input_size), dtype=dtype, minval=-bound, maxval=bound
    )


# TODO(synk): the module's `T` (x @ W) and `energy` (-f^T W g) methods are not
# implemented here; only the forward pass is translated.

if __name__ == "__main__":
    key = jax.random.PRNGKey(0)
    k_w, k_x = jax.random.split(key)

    batch, input_size, output_size = 8, 32, 64
    weight = init_linear_weight(k_w, output_size, input_size)
    x = jax.random.normal(k_x, (batch, input_size), dtype=jnp.float32)

    # f32 path (single-K-tile fast path, exercises (8,128) tile padding).
    y = linear_forward(x, weight)
    jax.block_until_ready(y)
    y_ref = x @ weight.T
    assert y.shape == (batch, output_size)
    assert jnp.allclose(y, y_ref, atol=1e-5, rtol=1e-5)

    # Leading-dims input + bf16 MXU operands (f32 accumulation), looser tol.
    x3 = jax.random.normal(
        jax.random.PRNGKey(1), (2, 8, input_size), dtype=jnp.float32
    )
    y3 = linear_forward(x3, weight, compute_dtype=jnp.bfloat16)
    jax.block_until_ready(y3)
    y3_ref = x3 @ weight.T
    assert y3.shape == (2, 8, output_size)
    assert jnp.allclose(y3, y3_ref, atol=2e-2, rtol=2e-2)

    # Multi-K-tile accumulator path (forces grid_k > 1 with small tiles).
    xb = jax.random.normal(jax.random.PRNGKey(2), (64, 512), dtype=jnp.float32)
    wb = init_linear_weight(jax.random.PRNGKey(3), 256, 512)
    yb = linear_forward(xb, wb, tm=64, tn=128, tk=128)
    jax.block_until_ready(yb)
    yb_ref = xb @ wb.T
    assert jnp.allclose(yb, yb_ref, atol=1e-4, rtol=1e-4)

    print("KERNEL_OK")
</pallas_src>

<mosaic_0001>
module attributes {stable_mosaic.version = 11 : i64} {
  func.func @_linear_kernel_single_k(%arg0: i32, %arg1: i32, %arg2: memref<8x128xf32, #tpu.memory_space<vmem>>, %arg3: memref<128x128xf32, #tpu.memory_space<vmem>>, %arg4: memref<8x128xf32, #tpu.memory_space<vmem>>) attributes {dimension_semantics = [#tpu.dimension_semantics<parallel>, #tpu.dimension_semantics<parallel>], iteration_bounds = array<i64: 1, 1>, scalar_prefetch = 0 : i64, scratch_operands = 0 : i64, tpu.core_type = #tpu.core_type<tc>, window_params = [{transform_indices = @transform_0, window_bounds = array<i64: 8, 128>}, {transform_indices = @transform_1, window_bounds = array<i64: 128, 128>}, {transform_indices = @transform_2, window_bounds = array<i64: 8, 128>}]} {
    %c0 = arith.constant 0 : index
    %c0_0 = arith.constant 0 : index
    %0 = vector.load %arg2[%c0, %c0_0] : memref<8x128xf32, #tpu.memory_space<vmem>>, vector<8x128xf32>
    %c0_1 = arith.constant 0 : index
    %c0_2 = arith.constant 0 : index
    %1 = vector.load %arg3[%c0_1, %c0_2] : memref<128x128xf32, #tpu.memory_space<vmem>>, vector<128x128xf32>
    %cst = arith.constant dense<0.000000e+00> : vector<8x128xf32>
    %2 = tpu.matmul %0, %1, %cst {dimension_numbers = #tpu.dot_dimension_numbers<[1], [1], [0], [0], [0, 0, 1, 0], [], []>} : vector<8x128xf32>, vector<128x128xf32>, vector<8x128xf32> -> vector<8x128xf32>
    %c0_3 = arith.constant 0 : index
    %c0_4 = arith.constant 0 : index
    %3 = vector.load %arg4[%c0_3, %c0_4] : memref<8x128xf32, #tpu.memory_space<vmem>>, vector<8x128xf32>
    tpu.vector_store %arg4[%c0_3, %c0_4], %2 {strides = array<i32>} : memref<8x128xf32, #tpu.memory_space<vmem>>, vector<8x128xf32>,
    return
  }
  func.func @transform_0(%arg0: i32, %arg1: i32) -> (i32, i32) {
    %c0_i32 = arith.constant 0 : i32
    %c0_i32_0 = arith.constant 0 : i32
    return %arg0, %c0_i32 : i32, i32
  }
  func.func @transform_1(%arg0: i32, %arg1: i32) -> (i32, i32) {
    %c0_i32 = arith.constant 0 : i32
    %c0_i32_0 = arith.constant 0 : i32
    return %arg1, %c0_i32 : i32, i32
  }
  func.func @transform_2(%arg0: i32, %arg1: i32) -> (i32, i32) {
    %c0_i32 = arith.constant 0 : i32
    return %arg0, %arg1 : i32, i32
  }
}

</mosaic_0001>

<bundles_post_ra>
// kernel: tpu_custom_call.1
= control target key start
LH: loop header
LB: loop body
LE: loop exit
PB: predicated region body
PF: predicated region fallthrough
CT: control target
= control target key end

     0   :  { %7 = vsyncpa [#allocation3], 0  ;;  %s210_s0 = inlined_call_operand.hbm [shape: f32[8,128], index: 0, kind: input, shape index: {}]   ;;  %s211_s1 = inlined_call_operand.hbm [shape: f32[128,128], index: 1, kind: input, shape index: {}]   ;;  %s212_s2 = inlined_call_operand.hbm [shape: f32[8,128], index: 2, kind: output, shape index: {}]  }
   0x1   :  { %8 = vsyncpa [#allocation6], 0 }
   0x2   :  { %9 = vsyncpa [#allocation4], 0  ;;  %s15_s11 = sshll.u32 %s210_s0, 4  ;;  %s181_s12 = smov [#allocation2]   ;;  %s16_s11 = int_to_ptr.hbm [resolvable:$true] %s15_s11 }
   0x3   :  { %s17_s13 = sshll.u32 %s181_s12, 4  ;;  %s25_s16 = sshll.u32 %s211_s1, 4  ;;  %s18_s13 = int_to_ptr.vmem [resolvable:$true] %s17_s13  ;;  %s26_s16 = int_to_ptr.hbm [resolvable:$true] %s25_s16 }
   0x4   :  { %20 = dma.hbm_to_vmem [thread:$0]  %s16_s11, 128, %s18_s13, [#allocation3]  }
   0x5   :  { %s182_s17 = smov [#allocation5]   ;;  %s183_s19 = smov 128  }
   0x6   :  { %s27_s18 = sshll.u32 %s182_s17, 4  ;;  %s184_s20 = smov 8   ;;  %s28_s18 = int_to_ptr.vmem [resolvable:$true] %s27_s18 }
   0x7   :  { %33 = dma.hbm_to_vmem [thread:$0]  %s26_s16, 2048, %s28_s18, [#allocation6], %s183_s19, %s183_s19, %s184_s20  }
   0x8   :  { %175 = dma.done.wait [#allocation3], 128  }
   0x9   :  { %176 = vsyncadd [#allocation3], 4294967168 }
   0xa   :  { %177 = dma.done.wait [#allocation6], 2048  }
   0xb   :  { %178 = vsyncadd [#allocation6], 4294965248  ;;  %v58_v0 = vld [vmem:[#allocation5 + $0x78] sm:$0xff]  ;;  %v57_v1 = vld [vmem:[#allocation5 + $0x70] sm:$0xff]  ;;  %s185_s0 = smov [#allocation7]   ;;  %s87_s23 = sshll.u32 %s212_s2, 4  ;;  %s88_s23 = int_to_ptr.hbm [resolvable:$true] %s87_s23 }
   0xc   :  { %59 = vmatpush.xpose.msra.mxu0 %v58_v0  ;;  %v56_v2 = vld [vmem:[#allocation5 + $0x68] sm:$0xff]  ;;  %v55_v3 = vld [vmem:[#allocation5 + $0x60] sm:$0xff]  ;;  %v54_v4 = vld [vmem:[#allocation5 + $0x58] sm:$0xff]  ;;  %s85_s1 = sshll.u32 %s185_s0, 4  ;;  %s86_s1 = int_to_ptr.vmem [resolvable:$true] %s85_s1 }
   0xd   :  { %v53_v5 = vld [vmem:[#allocation5 + $0x50] sm:$0xff]  ;;  %v52_v6 = vld [vmem:[#allocation5 + $0x48] sm:$0xff]  ;;  %v51_v7 = vld [vmem:[#allocation5 + $0x40] sm:$0xff] }
   0xe   :  { %v50_v8 = vld [vmem:[#allocation5 + $0x38] sm:$0xff]  ;;  %v49_v9 = vld [vmem:[#allocation5 + $0x30] sm:$0xff]  ;;  %v48_v10 = vld [vmem:[#allocation5 + $0x28] sm:$0xff] }
   0xf   :  { %v47_v11 = vld [vmem:[#allocation5 + $0x20] sm:$0xff]  ;;  %v46_v12 = vld [vmem:[#allocation5 + $0x18] sm:$0xff]  ;;  %v45_v13 = vld [vmem:[#allocation5 + $0x10] sm:$0xff] }
  0x10   :  { %60 = vmatpush.xpose.msra.mxu0 %v57_v1  ;;  %v44_v14 = vld [vmem:[#allocation5 + $0x8] sm:$0xff]  ;;  %v43_v15 = vld [vmem:[#allocation5] sm:$0xff]  ;;  %v42_v16 = vld [vmem:[#allocation2] sm:$0xff] }
  0x14   :  { %61 = vmatpush.xpose.msra.mxu0 %v56_v2 }
  0x18   :  { %62 = vmatpush.xpose.msra.mxu0 %v55_v3 }
  0x1c   :  { %63 = vmatpush.xpose.msra.mxu0 %v54_v4 }
  0x20   :  { %64 = vmatpush.xpose.msra.mxu0 %v53_v5 }
  0x24   :  { %65 = vmatpush.xpose.msra.mxu0 %v52_v6 }
  0x28   :  { %66 = vmatpush.xpose.msra.mxu0 %v51_v7 }
  0x2c   :  { %67 = vmatpush.xpose.msra.mxu0 %v50_v8 }
  0x30   :  { %68 = vmatpush.xpose.msra.mxu0 %v49_v9 }
  0x34   :  { %69 = vmatpush.xpose.msra.mxu0 %v48_v10 }
  0x38   :  { %70 = vmatpush.xpose.msra.mxu0 %v47_v11 }
  0x3c   :  { %71 = vmatpush.xpose.msra.mxu0 %v46_v12 }
  0x40   :  { %72 = vmatpush.xpose.msra.mxu0 %v45_v13 }
  0x44   :  { %73 = vmatpush.xpose.msra.mxu0 %v44_v14 }
  0x48   :  { %74 = vmatpush.xpose.msra.mxu0 %v43_v15 }
  0x4b   :  { %75 = vmatmul.f32.vlgmr.msra.gmra.mxu0 %v42_v16 }
  0xc8   :  { %v76_v17 = vpop.f32.mrf.mxu0 }
  0xc9   :  { %79 = vst [vmem:[#allocation7] sm:$0xff] %v76_v17 }
  0xca   :  { %90 = dma.vmem_to_hbm [thread:$0]  %s86_s1, 128, %s88_s23, [#allocation4]  }
  0xcb   :  { %179 = dma.done.wait [#allocation4], 128  }
  0xcc   :  { %180 = vsyncadd [#allocation4], 4294967168 }
  0xcd   :  { %95 = vsyncpa [#allocation3], 1 }
  0xce   :  { %96 = vsyncpa [#allocation6], 1 }
  0xcf   :  { %97 = vsyncpa [#allocation4], 1 }

</bundles_post_ra>
